<compile_context>
chip_gen: v6e
topology: v6e:2x2x1
jax: 0.10.0
libtpu: 0.0.40
codegen_flags: <defaults>
</compile_context>

<pallas_src>
import jax
import jax.numpy as jnp
from jax.experimental import pallas as pl
from jax.experimental.pallas import tpu as pltpu

LANE = 128  # TPU lane width; all channel dims are padded to this.


def _round_up(v, m):
    return ((v + m - 1) // m) * m


def avg_kernel(nz_cols_ref, nz_cnt_ref,        # scalar-prefetch (SMEM)
               a_ref, xw1_ref, amean_ref, b1_ref,
               out_ref, xacc_ref):
    c = pl.program_id(0)          # core / partial index ("parallel")
    i = pl.program_id(1)          # row tile within this core's half
    j = pl.program_id(2)          # nonzero column-block slot
    n_i = pl.num_programs(1)
    n_j = pl.num_programs(2)
    r = c * n_i + i               # global row-tile index

    # Per-core partial output: zero once at this core's first grid step.
    @pl.when((i == 0) & (j == 0))
    def _init_out():
        out_ref[...] = jnp.zeros_like(out_ref)

    # Per-row-tile accumulator for A_hat[row tile] @ (X W1).
    @pl.when(j == 0)
    def _init_xacc():
        xacc_ref[...] = jnp.zeros_like(xacc_ref)

    # Block-sparse masked K accumulation (bf16 x bf16, f32 accumulate).
    # Padded j slots point at block 0 (DMA'd but skipped here).
    @pl.when(j < nz_cnt_ref[r])
    def _accumulate():
        xacc_ref[...] += jnp.dot(a_ref[...], xw1_ref[...],
                                 preferred_element_type=jnp.float32)

    # Row tile done: bias + relu, then folded mean contraction
    #   out += mean_rows(A_hat)[:, row tile] @ h_tile
    @pl.when(j == n_j - 1)
    def _row_tile_done():
        h = jnp.maximum(xacc_ref[...] + b1_ref[...], 0.0)
        out_ref[...] += jnp.dot(amean_ref[...], h,
                                preferred_element_type=jnp.float32)[None, :, :]


def avg_forward(x, edge_index, params, *, tile=512):
    """x: [N, C_in] float32, edge_index: [2, E] int32 (src, dst).

    NOTE: the block-sparsity metadata / grid shape is computed from concrete
    adjacency, so this wrapper is not meant to be wrapped in jax.jit itself.
    """
    n, c_in = x.shape
    hid = params["w1"].shape[1]
    out_c = params["w_mu"].shape[1]
    assert c_in <= LANE and hid <= LANE and out_c <= LANE

    # ---- glue: dense symmetric-normalized adjacency with self-loops ----
    src, dst = edge_index[0], edge_index[1]
    a = jnp.zeros((n, n), jnp.float32).at[dst, src].set(1.0)
    a = a + jnp.eye(n, dtype=jnp.float32)
    deg = jnp.sum(a, axis=1)
    d_inv_sqrt = jnp.where(deg > 0, 1.0 / jnp.sqrt(deg), 0.0)
    a_hat = d_inv_sqrt[:, None] * a * d_inv_sqrt[None, :]

    # ---- tiling: tm/tk multiples of 128, rows padded so both cores get tiles ----
    tm = max(128, min(tile, _round_up(n, 128)))   # row tile (multiple of 128)
    tk = tm                                        # K (column) tile
    n_pad = _round_up(n, 2 * tm)                   # even number of row tiles
    R = n_pad // tm                                # total row tiles
    K = n_pad // tk                                # total column blocks
    R_half = R // 2                                # row tiles per core

    a_p = jnp.zeros((n_pad, n_pad), jnp.float32).at[:n, :n].set(a_hat)
    a_bf = a_p.astype(jnp.bfloat16)

    # Row-mean of A_hat (true-N divisor; padded rows/cols are zero). Replicated
    # over 8 sublanes so the (8, tm) @ (tm, 128) contraction is vreg-aligned.
    amean = jnp.sum(a_p, axis=0, keepdims=True) / float(n)
    amean8 = jnp.broadcast_to(amean, (8, n_pad)).astype(jnp.float32)

    # Hoisted first-layer weight matmul: X @ W1 in f32, padded, cast to bf16.
    xw1 = x @ params["w1"]                                        # (n, hid) f32
    xw1_p = (jnp.zeros((n_pad, LANE), jnp.float32)
             .at[:n, :hid].set(xw1).astype(jnp.bfloat16))
    b1_p = jnp.zeros((1, LANE), jnp.float32).at[:, :hid].set(params["b1"])

    # ---- block-sparsity metadata for scalar prefetch ----
    blk_nz = jnp.abs(a_p).reshape(R, tm, K, tk).max(axis=(1, 3)) > 0.0  # (R, K)
    nz_cnt = jnp.sum(blk_nz, axis=1).astype(jnp.int32)                  # (R,)
    J = max(int(jnp.max(nz_cnt)), 1)                                    # slots/row tile
    col_ids = jnp.arange(K, dtype=jnp.int32)
    sort_key = jnp.where(blk_nz, col_ids[None, :], col_ids[None, :] + K)
    order = jnp.argsort(sort_key, axis=1).astype(jnp.int32)   # nonzero cols first
    nz_cols = jnp.where(col_ids[None, :] < nz_cnt[:, None], order, 0)
    nz_cols = nz_cols[:, :J].reshape(-1).astype(jnp.int32)    # flat (R*J,)

    def a_map(c, i, j, cols, cnt):
        r = c * R_half + i
        return (r, cols[r * J + j])

    def xw1_map(c, i, j, cols, cnt):
        r = c * R_half + i
        return (cols[r * J + j], 0)

    def amean_map(c, i, j, cols, cnt):
        return (0, c * R_half + i)

    # ---- VMEM budget (double-buffered inputs + scratch) & cost estimate ----
    vmem_bytes = (2 * tm * tk * 2          # A_hat blocks (bf16)
                  + 2 * tk * LANE * 2      # XW1 blocks (bf16)
                  + 2 * 8 * tm * 4         # amean blocks
                  + 2 * LANE * 4           # b1
                  + 2 * 8 * LANE * 4       # output block
                  + tm * LANE * 4)         # xacc scratch
    vmem_limit = int(min(vmem_bytes + (8 << 20), 64 << 20))

    nnz_blocks = int(jnp.sum(nz_cnt))
    cost = pl.CostEstimate(
        flops=int(2 * nnz_blocks * tm * tk * LANE       # A_hat @ XW1 (nonzero blocks)
                  + 2 * R * 8 * tm * LANE),             # mean contraction
        transcendentals=0,
        bytes_accessed=int(nnz_blocks * tm * tk * 2
                           + 2 * R * J * tk * LANE * 2
                           + R * 8 * tm * 4 + 2 * 8 * LANE * 4),
    )

    out = pl.pallas_call(
        avg_kernel,
        out_shape=jax.ShapeDtypeStruct((2, 8, LANE), jnp.float32),
        grid_spec=pltpu.PrefetchScalarGridSpec(
            num_scalar_prefetch=2,
            grid=(2, R_half, J),
            in_specs=[
                pl.BlockSpec((tm, tk), a_map),          # A_hat (bf16, block-sparse)
                pl.BlockSpec((tk, LANE), xw1_map),      # X @ W1 (bf16)
                pl.BlockSpec((8, tm), amean_map),       # mean_rows(A_hat) slice
                pl.BlockSpec((1, LANE), lambda c, i, j, cols, cnt: (0, 0)),  # b1
            ],
            out_specs=pl.BlockSpec((1, 8, LANE),
                                   lambda c, i, j, cols, cnt: (c, 0, 0)),
            scratch_shapes=[
                pltpu.VMEM((tm, LANE), jnp.float32),    # per-row-tile accumulator
            ],
        ),
        compiler_params=pltpu.CompilerParams(
            dimension_semantics=("parallel", "arbitrary", "arbitrary"),
            vmem_limit_bytes=vmem_limit,
        ),
        cost_estimate=cost,
    )(nz_cols, nz_cnt, a_bf, xw1_p, amean8, b1_p)

    # Sum the two per-core partials; all 8 sublanes are identical -> take row 0.
    pooled = out[0, 0] + out[1, 0]            # (LANE,) pooled relu'd hidden mean
    h_mean = pooled[:hid]                     # (hid,)

    # Tiny fused second layer done OUTSIDE the kernel (f32).
    mu_mean = h_mean @ params["w_mu"] + params["b_mu"][0]
    ls_mean = h_mean @ params["w_ls"] + params["b_ls"][0]

    # Broadcast to N identical rows OUTSIDE the kernel (no redundant stores).
    mu = jnp.broadcast_to(mu_mean[None, :], (n, out_c))
    logstd = jnp.broadcast_to(ls_mean[None, :], (n, out_c))
    return mu, logstd


def init_params(key, in_channels, out_channels):
    k1, k2, k3 = jax.random.split(key, 3)
    hid = 2 * out_channels

    def glorot(k, fan_in, fan_out):
        s = jnp.sqrt(6.0 / (fan_in + fan_out))
        return jax.random.uniform(k, (fan_in, fan_out), jnp.float32, -s, s)

    return {
        "w1":   glorot(k1, in_channels, hid),
        "b1":   jnp.zeros((1, hid), jnp.float32),
        "w_mu": glorot(k2, hid, out_channels),
        "b_mu": jnp.zeros((1, out_channels), jnp.float32),
        "w_ls": glorot(k3, hid, out_channels),
        "b_ls": jnp.zeros((1, out_channels), jnp.float32),
    }


def avg_reference(x, edge_index, params):
    """Pure-JAX f32 reference for sanity checking."""
    n = x.shape[0]
    src, dst = edge_index[0], edge_index[1]
    a = jnp.zeros((n, n), jnp.float32).at[dst, src].set(1.0)
    a = a + jnp.eye(n, dtype=jnp.float32)
    deg = jnp.sum(a, axis=1)
    dis = jnp.where(deg > 0, 1.0 / jnp.sqrt(deg), 0.0)
    a_hat = dis[:, None] * a * dis[None, :]

    h = jnp.maximum(a_hat @ (x @ params["w1"]) + params["b1"], 0.0)
    mu = a_hat @ (h @ params["w_mu"]) + params["b_mu"]
    ls = a_hat @ (h @ params["w_ls"]) + params["b_ls"]
    mu_m = jnp.mean(mu, axis=0, keepdims=True)
    ls_m = jnp.mean(ls, axis=0, keepdims=True)
    return jnp.tile(mu_m, (n, 1)), jnp.tile(ls_m, (n, 1))


if __name__ == "__main__":
    key = jax.random.PRNGKey(0)
    kx, kp = jax.random.split(key)

    N, IN_C, OUT_C = 8, 4, 8
    x = jax.random.normal(kx, (N, IN_C), jnp.float32)

    # small deterministic undirected ring graph
    idx = jnp.arange(N, dtype=jnp.int32)
    nxt = (idx + 1) % N
    edge_index = jnp.stack(
        [jnp.concatenate([idx, nxt]), jnp.concatenate([nxt, idx])], axis=0
    )

    params = init_params(kp, IN_C, OUT_C)

    mu, logstd = avg_forward(x, edge_index, params)
    jax.block_until_ready((mu, logstd))

    mu_ref, ls_ref = avg_reference(x, edge_index, params)
    # bf16 is used for the dominant A_hat / XW1 streams (f32 accumulation).
    assert jnp.allclose(mu, mu_ref, atol=5e-2, rtol=5e-2), "mu mismatch"
    assert jnp.allclose(logstd, ls_ref, atol=5e-2, rtol=5e-2), "logstd mismatch"
    assert mu.shape == (N, OUT_C) and logstd.shape == (N, OUT_C)

    print("KERNEL_OK")
</pallas_src>

<mosaic_0001>
module attributes {stable_mosaic.version = 11 : i64} {
  func.func @avg_kernel(%arg0: i32, %arg1: i32, %arg2: i32, %arg3: memref<2xi32, #tpu.memory_space<smem>>, %arg4: memref<2xi32, #tpu.memory_space<smem>>, %arg5: memref<128x128xbf16, #tpu.memory_space<vmem>>, %arg6: memref<128x128xbf16, #tpu.memory_space<vmem>>, %arg7: memref<8x128xf32, #tpu.memory_space<vmem>>, %arg8: memref<1x128xf32, #tpu.memory_space<vmem>>, %arg9: memref<1x8x128xf32, #tpu.memory_space<vmem>>, %arg10: memref<128x128xf32, #tpu.memory_space<vmem>>) attributes {dimension_semantics = [#tpu.dimension_semantics<parallel>, #tpu.dimension_semantics<arbitrary>, #tpu.dimension_semantics<arbitrary>], iteration_bounds = array<i64: 2, 1, 1>, scalar_prefetch = 2 : i64, scratch_operands = 1 : i64, tpu.core_type = #tpu.core_type<tc>, window_params = [{transform_indices = @transform_0, window_bounds = array<i64: 128, 128>}, {transform_indices = @transform_1, window_bounds = array<i64: 128, 128>}, {transform_indices = @transform_2, window_bounds = array<i64: 8, 128>}, {pipeline_mode = #tpu.pipeline_mode<synchronous>, transform_indices = @transform_3, window_bounds = array<i64: 1, 128>}, {transform_indices = @transform_4, window_bounds = array<i64: 1, 8, 128>}]} {
    %c1_i32 = arith.constant 1 : i32
    %0 = arith.muli %arg0, %c1_i32 : i32
    %1 = arith.addi %0, %arg1 : i32
    %c0_i32 = arith.constant 0 : i32
    %2 = arith.cmpi eq, %arg1, %c0_i32 : i32
    %c0_i32_0 = arith.constant 0 : i32
    %3 = arith.cmpi eq, %arg2, %c0_i32_0 : i32
    %4 = arith.andi %2, %3 : i1
    %5 = arith.extui %4 : i1 to i32
    %c0_i32_1 = arith.constant 0 : i32
    %6 = arith.cmpi ne, %5, %c0_i32_1 : i32
    scf.if %6 {
      %cst = arith.constant 0.000000e+00 : f32
      %18 = vector.broadcast %cst : f32 to vector<1x8x128xf32>
      %c0 = arith.constant 0 : index
      %c0_7 = arith.constant 0 : index
      %c0_8 = arith.constant 0 : index
      %19 = vector.load %arg9[%c0, %c0_7, %c0_8] : memref<1x8x128xf32, #tpu.memory_space<vmem>>, vector<1x8x128xf32>
      tpu.vector_store %arg9[%c0, %c0_7, %c0_8], %18 {strides = array<i32>} : memref<1x8x128xf32, #tpu.memory_space<vmem>>, vector<1x8x128xf32>,
    } else {
    }
    %c0_i32_2 = arith.constant 0 : i32
    %7 = arith.cmpi eq, %arg2, %c0_i32_2 : i32
    %8 = arith.extui %7 : i1 to i32
    %c0_i32_3 = arith.constant 0 : i32
    %9 = arith.cmpi ne, %8, %c0_i32_3 : i32
    scf.if %9 {
      %cst = arith.constant 0.000000e+00 : f32
      %18 = vector.broadcast %cst : f32 to vector<128x128xf32>
      %c0 = arith.constant 0 : index
      %c0_7 = arith.constant 0 : index
      %19 = vector.load %arg10[%c0, %c0_7] : memref<128x128xf32, #tpu.memory_space<vmem>>, vector<128x128xf32>
      tpu.vector_store %arg10[%c0, %c0_7], %18 {strides = array<i32>} : memref<128x128xf32, #tpu.memory_space<vmem>>, vector<128x128xf32>,
    } else {
    }
    %10 = arith.index_cast %1 : i32 to index
    %11 = memref.load %arg4[%10] : memref<2xi32, #tpu.memory_space<smem>>
    %12 = arith.cmpi slt, %arg2, %11 : i32
    %13 = arith.extui %12 : i1 to i32
    %c0_i32_4 = arith.constant 0 : i32
    %14 = arith.cmpi ne, %13, %c0_i32_4 : i32
    scf.if %14 {
      %c0 = arith.constant 0 : index
      %c0_7 = arith.constant 0 : index
      %18 = vector.load %arg10[%c0, %c0_7] : memref<128x128xf32, #tpu.memory_space<vmem>>, vector<128x128xf32>
      %c0_8 = arith.constant 0 : index
      %c0_9 = arith.constant 0 : index
      %19 = vector.load %arg5[%c0_8, %c0_9] : memref<128x128xbf16, #tpu.memory_space<vmem>>, vector<128x128xbf16>
      %c0_10 = arith.constant 0 : index
      %c0_11 = arith.constant 0 : index
      %20 = vector.load %arg6[%c0_10, %c0_11] : memref<128x128xbf16, #tpu.memory_space<vmem>>, vector<128x128xbf16>
      %cst = arith.constant dense<0.000000e+00> : vector<128x128xf32>
      %21 = tpu.matmul %19, %20, %cst {dimension_numbers = #tpu.dot_dimension_numbers<[1], [0], [0], [1], [0, 0, 1, 1], [], []>} : vector<128x128xbf16>, vector<128x128xbf16>, vector<128x128xf32> -> vector<128x128xf32>
      %22 = arith.addf %18, %21 : vector<128x128xf32>
      %c0_12 = arith.constant 0 : index
      %c0_13 = arith.constant 0 : index
      %23 = vector.load %arg10[%c0_12, %c0_13] : memref<128x128xf32, #tpu.memory_space<vmem>>, vector<128x128xf32>
      tpu.vector_store %arg10[%c0_12, %c0_13], %22 {strides = array<i32>} : memref<128x128xf32, #tpu.memory_space<vmem>>, vector<128x128xf32>,
    } else {
    }
    %c0_i32_5 = arith.constant 0 : i32
    %15 = arith.cmpi eq, %arg2, %c0_i32_5 : i32
    %16 = arith.extui %15 : i1 to i32
    %c0_i32_6 = arith.constant 0 : i32
    %17 = arith.cmpi ne, %16, %c0_i32_6 : i32
    scf.if %17 {
      %c0 = arith.constant 0 : index
      %c0_7 = arith.constant 0 : index
      %18 = vector.load %arg10[%c0, %c0_7] : memref<128x128xf32, #tpu.memory_space<vmem>>, vector<128x128xf32>
      %c0_8 = arith.constant 0 : index
      %c0_9 = arith.constant 0 : index
      %19 = vector.load %arg8[%c0_8, %c0_9] : memref<1x128xf32, #tpu.memory_space<vmem>>, vector<1x128xf32>
      %20 = vector.broadcast %19 : vector<1x128xf32> to vector<128x128xf32>
      %21 = arith.addf %18, %20 : vector<128x128xf32>
      %cst = arith.constant 0.000000e+00 : f32
      %22 = vector.broadcast %cst : f32 to vector<128x128xf32>
      %23 = arith.maximumf %21, %22 : vector<128x128xf32>
      %c0_10 = arith.constant 0 : index
      %c0_11 = arith.constant 0 : index
      %c0_12 = arith.constant 0 : index
      %24 = vector.load %arg9[%c0_10, %c0_11, %c0_12] : memref<1x8x128xf32, #tpu.memory_space<vmem>>, vector<1x8x128xf32>
      %c0_13 = arith.constant 0 : index
      %c0_14 = arith.constant 0 : index
      %25 = vector.load %arg7[%c0_13, %c0_14] : memref<8x128xf32, #tpu.memory_space<vmem>>, vector<8x128xf32>
      %cst_15 = arith.constant dense<0.000000e+00> : vector<8x128xf32>
      %26 = tpu.matmul %25, %23, %cst_15 {dimension_numbers = #tpu.dot_dimension_numbers<[1], [0], [0], [1], [0, 0, 1, 1], [], []>} : vector<8x128xf32>, vector<128x128xf32>, vector<8x128xf32> -> vector<8x128xf32>
      %27 = vector.shape_cast %26 : vector<8x128xf32> to vector<1x8x128xf32>
      %28 = arith.addf %24, %27 : vector<1x8x128xf32>
      %c0_16 = arith.constant 0 : index
      %c0_17 = arith.constant 0 : index
      %c0_18 = arith.constant 0 : index
      %29 = vector.load %arg9[%c0_16, %c0_17, %c0_18] : memref<1x8x128xf32, #tpu.memory_space<vmem>>, vector<1x8x128xf32>
      tpu.vector_store %arg9[%c0_16, %c0_17, %c0_18], %28 {strides = array<i32>} : memref<1x8x128xf32, #tpu.memory_space<vmem>>, vector<1x8x128xf32>,
    } else {
    }
    return
  }
  func.func @transform_0(%arg0: i32, %arg1: i32, %arg2: i32, %arg3: memref<2xi32, #tpu.memory_space<smem>>, %arg4: memref<2xi32, #tpu.memory_space<smem>>) -> (i32, i32) {
    %c1_i32 = arith.constant 1 : i32
    %0 = arith.muli %arg0, %c1_i32 : i32
    %1 = arith.addi %0, %arg1 : i32
    %c1_i32_0 = arith.constant 1 : i32
    %2 = arith.muli %1, %c1_i32_0 : i32
    %3 = arith.addi %2, %arg2 : i32
    %4 = arith.index_cast %3 : i32 to index
    %5 = memref.load %arg3[%4] : memref<2xi32, #tpu.memory_space<smem>>
    %c0_i32 = arith.constant 0 : i32
    return %1, %5 : i32, i32
  }
  func.func @transform_1(%arg0: i32, %arg1: i32, %arg2: i32, %arg3: memref<2xi32, #tpu.memory_space<smem>>, %arg4: memref<2xi32, #tpu.memory_space<smem>>) -> (i32, i32) {
    %c1_i32 = arith.constant 1 : i32
    %0 = arith.muli %arg0, %c1_i32 : i32
    %1 = arith.addi %0, %arg1 : i32
    %c1_i32_0 = arith.constant 1 : i32
    %2 = arith.muli %1, %c1_i32_0 : i32
    %3 = arith.addi %2, %arg2 : i32
    %4 = arith.index_cast %3 : i32 to index
    %5 = memref.load %arg3[%4] : memref<2xi32, #tpu.memory_space<smem>>
    %c0_i32 = arith.constant 0 : i32
    %c0_i32_1 = arith.constant 0 : i32
    return %5, %c0_i32 : i32, i32
  }
  func.func @transform_2(%arg0: i32, %arg1: i32, %arg2: i32, %arg3: memref<2xi32, #tpu.memory_space<smem>>, %arg4: memref<2xi32, #tpu.memory_space<smem>>) -> (i32, i32) {
    %c1_i32 = arith.constant 1 : i32
    %0 = arith.muli %arg0, %c1_i32 : i32
    %1 = arith.addi %0, %arg1 : i32
    %c0_i32 = arith.constant 0 : i32
    %c0_i32_0 = arith.constant 0 : i32
    return %c0_i32, %1 : i32, i32
  }
  func.func @transform_3(%arg0: i32, %arg1: i32, %arg2: i32, %arg3: memref<2xi32, #tpu.memory_space<smem>>, %arg4: memref<2xi32, #tpu.memory_space<smem>>) -> (i32, i32) {
    %c0_i32 = arith.constant 0 : i32
    %c0_i32_0 = arith.constant 0 : i32
    %c0_i32_1 = arith.constant 0 : i32
    return %c0_i32, %c0_i32_0 : i32, i32
  }
  func.func @transform_4(%arg0: i32, %arg1: i32, %arg2: i32, %arg3: memref<2xi32, #tpu.memory_space<smem>>, %arg4: memref<2xi32, #tpu.memory_space<smem>>) -> (i32, i32, i32) {
    %c0_i32 = arith.constant 0 : i32
    %c0_i32_0 = arith.constant 0 : i32
    %c0_i32_1 = arith.constant 0 : i32
    return %arg0, %c0_i32, %c0_i32_0 : i32, i32, i32
  }
}

</mosaic_0001>

<bundles_post_ra>
// kernel: tpu_custom_call.1
= control target key start
LH: loop header
LB: loop body
LE: loop exit
PB: predicated region body
PF: predicated region fallthrough
CT: control target
= control target key end

     0   :  { %s1487_s21 = smov [#allocation4]   ;;  %s2003_s0 = inlined_call_operand.hbm [shape: s32[2], index: 0, kind: input, shape index: {}]   ;;  %s2004_s2 = inlined_call_operand.hbm [shape: bf16[256,256], index: 2, kind: input, shape index: {}]   ;;  %s2005_s3 = inlined_call_operand.hbm [shape: bf16[256,128], index: 3, kind: input, shape index: {}]   ;;  %s2006_s4 = inlined_call_operand.hbm [shape: f32[8,256], index: 4, kind: input, shape index: {}]   ;;  %s2007_s5 = inlined_call_operand.vmem [shape: f32[1,128], index: 5, kind: input, shape index: {}]   ;;  %s2008_s6 = inlined_call_operand.hbm [shape: f32[2,8,128], index: 6, kind: output, shape index: {}]   ;;  %s2009_s1 = inlined_call_operand.vmem [shape: s32[2], index: 1, kind: input, shape index: {}]  }
   0x1   :  { %2020 = sst [smem:[#allocation27_spill]] %s2005_s3  ;;  %s13_s26 = sshll.u32 %s2009_s1, 4  ;;  %s14_s26 = int_to_ptr.vmem [resolvable:$true] %s13_s26 }
   0x2   :  { %2021 = sst [smem:[#allocation28_spill]] %s2007_s5  ;;  %s1251_s27 = scalar_lea.vmem %s14_s26, 16 }
   0x3   :  { %2022 = sst [smem:[#allocation29_spill]] %s2008_s6  ;;  %p1252_p0 = scmp.ne.s32.totalorder %s14_s26, %s1251_s27 }
   0x4   :  { %12 = dma.hbm_to_smem %s2003_s0, 16, %s1487_s21, [#allocation3] }
   0x5   :  { %p1256_p1 = scmp.lt.s32.totalorder %s14_s26, %s14_s26  ;;  %p1257_p2 = scmp.lt.s32.totalorder %s1251_s27, %s1251_s27 }
   0x7   :  { %p1258_p3 = por %p1257_p2, %p1256_p1 }
   0x9   :  { %p1259_p4 = pnand %p1258_p3, %p1252_p0 }
   0xb   :  { %1262 = shalt.err (!%p1259_p4)  }
   0xc   :  { %s1488_s28 = smov [#allocation5]  }
   0xd   :  { %16 = dma.vmem_to_smem %s14_s26, 16, %s1488_s28, [#allocation3] }
   0xe   :  { %1421 = dma.done.wait [#allocation3], 32 }
   0xf   :  { %1422 = vsyncadd [#allocation3], 4294967264 }
  0x10   :  { %18 = sfence }
  0x11   :  { %19 = vsyncpa [#allocation7], 0 }
  0x12   :  { %21 = vsyncpa [#allocation7 + $0x1], 0 }
  0x13   :  { %22 = vsyncpa [#allocation10], 0 }
  0x14   :  { %24 = vsyncpa [#allocation10 + $0x1], 0 }
  0x15   :  { %25 = vsyncpa [#allocation8], 0 }
  0x16   :  { %27 = vsyncpa [#allocation8 + $0x1], 0  ;;  %s1539_s0 = smov 0   ;;  %s1541_s1 = smov 0  }
  0x17   :  { %s1543_s29 = smov 0   ;;  %s1545_s30 = smov 0  }
  0x18   :  { %s1547_s7 = smov 0   ;;  %s1549_s8 = smov 0  }
  0x19   :  { %s1551_s9 = smov 0   ;;  %s1553_s10 = smov 0  }
  0x1a   :  { %s1555_s11 = smov 0   ;;  %s1557_s12 = smov 0  }
  0x1b   :  { %s1559_s13 = smov 0   ;;  %s1561_s14 = smov 0  }
  0x1c LB: > { %2023 = sst [smem:[#allocation22_spill]] %s1461_s8  ;;  %s52_s15 = sadd.s32 1, %s1481_s13  ;;  %s1485_s14 = sphi %s1561_s14, %s33_s14   ;;  %s1481_s13 = sphi %s1559_s13, %s2077_s13   ;;  %s1477_s12 = sphi %s1557_s12, %s2076_s12   ;;  %s1473_s11 = sphi %s1555_s11, %s2075_s11   ;;  %s1469_s10 = sphi %s1553_s10, %s2074_s10   ;;  %s1465_s9 = sphi %s1551_s9, %s2073_s9   ;;  %s1461_s8 = sphi %s1549_s8, %s2067_s8   ;;  %s1457_s7 = sphi %s1547_s7, %s2072_s7   ;;  %s1453_s30 = sphi %s1545_s30, %s2071_s30   ;;  %s1449_s29 = sphi %s1543_s29, %s2070_s29   ;;  %s1445_s1 = sphi %s1541_s1, %s2069_s1   ;;  %s1441_s0 = sphi %s1539_s0, %s2068_s0  }
  0x1d   : > { %2024 = sst [smem:[#allocation23_spill]] %s1477_s12  ;;  %p2010_p5 = scmp.eq.s32.totalorder %s1485_s14, 0 }
  0x1e   : > { %p54_p6 = scmp.ge.s32.totalorder %s52_s15, 2  ;;  %s92_s16 = sld [smem:[#allocation4 + %s1481_s13]] }
  0x1f   : > { %s99_s17 = sadd.s32 1, %s1461_s8  ;;  %p106_p7 = scmp.ne.s32.totalorder %s1461_s8, %s1457_s7 }
  0x20   : > { %s2079_s15 = smov (%p54_p6, %s52_s15), 0  ;;  %p2013_p11 = scmp.lt.s32.totalorder %s1485_s14, 2 }
  0x21   : > { %p1609_p8 = por %p106_p7, %p2010_p5  ;;  %s95_s19 = sld [smem:[#allocation4 + %s2079_s15]] }
  0x22   : > { %s240_s20 = sand.u32 1, %s1485_s14   ;;  %s242_s21 = sand.u32 1, %s1461_s8  }
  0x23   : > { %s941_s22 = sshll.u32 %s242_s21, 6  ;;  %p1624_p12 = pnand %p2013_p11, %p1609_p8 }
  0x24   : > { %p946_p13 = scmp.ge.s32.totalorder %s1485_s14, 1  ;;  %s244_s25 = scalar_lea.vmem [#allocation9], %s941_s22 }
  0x25   : > { %s254_s26 = sshll.u32 %s244_s25, 4  ;;  %p281_p1 = scmp.lt.s32.totalorder %s1485_s14, 3  ;;  %s1629_s26 = int_to_ptr.vmem [resolvable:$true] %s254_s26 }
  0x26   : > { %s1095_s27 = scalar_select %p1609_p8, [#allocation4], [#allocation14] }
  0x27   : > { %s96_s24 = ssub.s32 %s92_s16, %s95_s19  ;;  %p1646_p2 = pnand %p946_p13, %p281_p1 }
  0x28   : > { %p97_p0 = scmp.eq.s32.totalorder %s96_s24, 0  ;;  %s2081_s27 = smov (!%p2013_p11, %s1095_s27), [#allocation16] }
  0x29   : > { %s1096_s21 = scalar_select %p1609_p8, %s1481_s13, 0 }
  0x2a   : > { %s1634_s28 = scalar_select %p97_p0, %s1461_s8, %s99_s17  }
  0x2b   : > { %s2083_s21 = smov (!%p2013_p11, %s1096_s21), 0  ;;  %p74_p3 = scmp.ne.s32.totalorder %s1473_s11, %s1469_s10 }
  0x2c   : > { %2027 = sst [smem:[#allocation24_spill]] %s1634_s28  ;;  %p1265_p8 = pneg %p1624_p12 }
  0x2d   : > { %s247_s16 = sld [smem:[%s2081_s27 + %s2083_s21]]  ;;  %p1662_p6 = por %p2010_p5, %p74_p3 }
  0x2e   : > { %s2028_s19 = scalar_select %p1646_p2, 1, 0 }
  0x2f   : > { %s2030_s3 = sld [smem:[#allocation27_spill]]  ;;  %s1666_s21 = scalar_lea.sflag [#allocation10], %s240_s20 }
  0x30   : > { %2029 = sst [smem:[#allocation25_spill]] %s2028_s19 }
  0x31   : > { %s2031_s27 = scalar_select %p1662_p6, 1, 0 }
  0x32   : > { %2032 = sst [smem:[#allocation26_spill]] %s1666_s21 }
  0x33   : > { %s975_s24 = sshll.u32 %s247_s16, 10 }
  0x35   : > { %s1658_s18 = scalar_lea.hbm %s2030_s3, %s975_s24  ;;  %s1268_s24 = scalar_lea.hbm %s2030_s3, 2048 }
  0x36   : > { %s1263_s28 = scalar_lea.hbm %s1658_s18, 1024  ;;  %p1269_p1 = scmp.lt.s32.totalorder %s1658_s18, %s2030_s3 }
  0x37   : > { %p1264_p7 = scmp.ne.s32.totalorder %s1658_s18, %s1263_s28  ;;  %p1270_p3 = scmp.lt.s32.totalorder %s1268_s24, %s1263_s28 }
  0x39   : > { %p1266_p13 = pnand %p1265_p8, %p1264_p7  ;;  %p1271_p10 = por %p1270_p3, %p1269_p1 }
  0x3b   : > { %p1267_p0 = pneg %p1266_p13 }
  0x3d   : > { %p1272_p5 = pnand %p1271_p10, %p1267_p0 }
  0x3f   : > { %1275 = shalt.err (!%p1272_p5)
}
  0x40   : > { %s1276_s20 = scalar_lea.vmem %s1629_s26, 1024  ;;  %s1489_s8 = smov [#allocation9]  }
  0x41   : > { %p1277_p9 = scmp.ne.s32.totalorder %s1629_s26, %s1276_s20  ;;  %s1281_s6 = sshll.u32 %s1489_s8, 4  ;;  %s1282_s6 = int_to_ptr.vmem [resolvable:$false] %s1281_s6 }
  0x42   : > { %s1283_s16 = scalar_lea.vmem %s1282_s6, 2048  ;;  %p1284_p13 = scmp.lt.s32.totalorder %s1629_s26, %s1282_s6 }
  0x43   : > { %p1279_p4 = pnand %p1277_p9, %p1265_p8  ;;  %p1285_p11 = scmp.lt.s32.totalorder %s1283_s16, %s1276_s20 }
  0x45   : > { %p1280_p7 = pneg %p1279_p4  ;;  %p1286_p2 = por %p1285_p11, %p1284_p13 }
  0x47   : > { %p1287_p6 = pnand %p1286_p2, %p1280_p7 }
  0x49   : > { %1290 = shalt.err (!%p1287_p6)
}
  0x4a   : > { %s2015_s28 = smov 64   ;;  %s2016_s6 = smov 4  }
  0x4b   : > { %1114 = dma.hbm_to_vmem [thread:$0]  (!%p1624_p12), %s1658_s18, 1024, %s1629_s26, %s1666_s21, %s2015_s28, %s2015_s28, %s2016_s6  }
  0x4c   : > { %s214_s8 = sand.u32 1, %s1473_s11   ;;  %s974_s22 = sshll.u32 %s1481_s13, 5 }
  0x4d   : > { %s937_s17 = sshll.u32 %s214_s8, 6  ;;  %p2033_p5 = scmp.ne.s32.totalorder %s2031_s27, 0 }
  0x4e   : > { %p2034_p9 = scmp.lt.s32.totalorder %s1485_s14, 2  ;;  %s218_s26 = scalar_lea.vmem [#allocation6], %s937_s17 }
  0x4f   : > { %s1092_s25 = scalar_select %p2033_p5, [#allocation4], [#allocation13] }
  0x50   : > { %p1696_p10 = pnand %p2034_p9, %p2033_p5  ;;  %p2036_p11 = pmov %p2034_p9 }
  0x51   : > { %s1093_s23 = scalar_select %p2033_p5, %s1481_s13, 0 }
  0x52   : > { %s2085_s25 = smov (!%p2036_p11, %s1092_s25), [#allocation15]  ;;  %p2037_p2 = pmov %p2034_p9 }
  0x53   : > { %s230_s18 = sshll.u32 %s218_s26, 4  ;;  %s1712_s16 = sadd.s32 4294967295, %s1485_s14   ;;  %s1709_s18 = int_to_ptr.vmem [resolvable:$true] %s230_s18 }
  0x54   : > { %s2087_s23 = smov (!%p2037_p2, %s1093_s23), 0  ;;  %s934_s28 = sadd.s32 4294967294, %s1485_s14  }
  0x55   : > { %s221_s20 = sld [smem:[%s2085_s25 + %s2087_s23]]  ;;  %s1723_s12 = ssub.s32 %s1481_s13, %s2079_s15 }
  0x56   : > { %s1716_s6 = sld [smem:[#allocation4 + %s1481_s13]]  ;;  %s1731_s25 = scalar_lea.sflag [#allocation7], %s214_s8 }
  0x57   : > { %s1719_s5 = sld [smem:[#allocation4 + %s2079_s15]]  ;;  %p1293_p6 = pneg %p1696_p10 }
  0x58   : > { %s1296_s26 = scalar_lea.hbm %s2004_s2, 4096 }
  0x5b   : > { %s227_s3 = sadd.s32 %s974_s22, %s221_s20 }
  0x5c   : > { %s940_s27 = sshll.u32 %s227_s3, 6 }
  0x5d   : > { %s1728_s17 = scalar_lea.hbm %s2004_s2, %s940_s27 }
  0x5e   : > { %s1291_s23 = scalar_lea.hbm %s1728_s17, 1024  ;;  %p1297_p1 = scmp.lt.s32.totalorder %s1728_s17, %s2004_s2 }
  0x5f   : > { %p1292_p4 = scmp.ne.s32.totalorder %s1728_s17, %s1291_s23  ;;  %p1298_p3 = scmp.lt.s32.totalorder %s1296_s26, %s1291_s23 }
  0x61   : > { %p1294_p8 = pnand %p1293_p6, %p1292_p4  ;;  %p1299_p7 = por %p1298_p3, %p1297_p1 }
  0x63   : > { %p1295_p0 = pneg %p1294_p8 }
  0x65   : > { %p1300_p13 = pnand %p1299_p7, %p1295_p0 }
  0x67   : > { %1303 = shalt.err (!%p1300_p13)
}
  0x68   : > { %s1304_s21 = scalar_lea.vmem %s1709_s18, 1024  ;;  %s1492_s8 = smov [#allocation6]  }
  0x69   : > { %p1305_p5 = scmp.ne.s32.totalorder %s1709_s18, %s1304_s21  ;;  %s1309_s27 = sshll.u32 %s1492_s8, 4  ;;  %s1310_s27 = int_to_ptr.vmem [resolvable:$false] %s1309_s27 }
  0x6a   : > { %s1311_s3 = scalar_lea.vmem %s1310_s27, 2048  ;;  %p1312_p2 = scmp.lt.s32.totalorder %s1709_s18, %s1310_s27 }
  0x6b   : > { %p1307_p9 = pnand %p1305_p5, %p1293_p6  ;;  %p1313_p4 = scmp.lt.s32.totalorder %s1311_s3, %s1304_s21 }
  0x6d   : > { %p1308_p11 = pneg %p1307_p9  ;;  %p1314_p8 = por %p1313_p4, %p1312_p2 }
  0x6f   : > { %p1315_p12 = pnand %p1314_p8, %p1308_p11 }
  0x71   : > { %1318 = shalt.err (!%p1315_p12)
}
  0x72   : > { %s1493_s23 = smov 128   ;;  %s2038_s22 = smov 4  }
  0x73   : > { %s2039_s26 = smov 64   ;;  %p2040_p12 = scmp.ne.s32.totalorder %s1469_s10, %s1465_s9 }
  0x74   : > { %1109 = dma.hbm_to_vmem [thread:$0]  (!%p1696_p10), %s1728_s17, 1024, %s1709_s18, %s1731_s25, %s1493_s23, %s2039_s26, %s2038_s22  }
  0x75   : > { %p2041_p6 = scmp.eq.s32.totalorder %s1712_s16, 0  ;;  %p2044_p3 = scmp.ne.s32.totalorder %s1457_s7, %s1453_s30 }
  0x76   : > { %p125_p13 = scmp.eq.s32.totalorder %s1723_s12, 0  ;;  %s127_s19 = sadd.s32 1, %s1449_s29 }
  0x77   : > { %p1759_p0 = por %p2041_p6, %p2040_p12  ;;  %p2043_p1 = pmov %p2041_p6 }
  0x78   : > { %s63_s21 = ssub.s32 %s1716_s6, %s1719_s5  ;;  %p134_p5 = scmp.ne.s32.totalorder %s1449_s29, %s1445_s1 }
  0x79   : > { %p1768_p7 = por %p2044_p3, %p2043_p1  ;;  %s64_s8 = sor.u32 %s63_s21, %s1723_s12 }
  0x7a   : > { %p140_p10 = scmp.ne.s32.totalorder %s1445_s1, %s1441_s0  ;;  %p65_p9 = scmp.eq.s32.totalorder %s64_s8, 0 }
  0x7b   : > { %p2046_p11 = scmp.eq.s32.totalorder %s1485_s14, 0  ;;  %s2048_s18 = sadd.s32 1, %s1473_s11 }
  0x7c   : > { %s1788_s30 = scalar_select %p125_p13, %s1449_s29, %s127_s19  }
  0x7d   : > { %p1783_p2 = por %p134_p5, %p2046_p11  ;;  %p2049_p4 = pmov %p2043_p1 }
  0x7e   : > { %s1793_s17 = scalar_select %p65_p9, %s1473_s11, %s2048_s18  }
  0x7f   : > { %p1797_p8 = por %p140_p10, %p2049_p4  ;;  %p185_p12 = scmp.eq.s32.totalorder %s1712_s16, 1 }
  0x80   : > { %p191_p6 = scmp.eq.s32.totalorder %s934_s28, 1  ;;  %s266_s5 = sand.u32 1, %s1449_s29  }
  0x81   : > { %p1805_p1 = por %p185_p12, %p134_p5  ;;  %s944_s6 = sshll.u32 %s266_s5, 3 }
  0x82   : > { %p1809_p3 = por %p191_p6, %p140_p10  ;;  %s945_s3 = sshll.u32 %s1481_s13, 7 }
  0x83   : > { %s2051_s12 = scalar_select %p1805_p1, 1, 0 }
  0x84   : > { %s2052_s27 = scalar_select %p1809_p3, 1, 0 }
  0x85   : > { %s268_s23 = scalar_lea.vmem [#allocation11], %s944_s6  ;;  %s274_s21 = scalar_lea.hbm %s2006_s4, %s945_s3 }
  0x86   : > { %s276_s22 = sshll.u32 %s268_s23, 4  ;;  %p2053_p13 = scmp.lt.s32.totalorder %s1485_s14, 2  ;;  %s277_s22 = int_to_ptr.vmem [resolvable:$true] %s276_s22 }
  0x87   : > { %s1332_s8 = scalar_lea.vmem %s277_s22, 128  ;;  %s1494_s18 = smov [#allocation11]  }
  0x88   : > { %p1821_p9 = pnand %p2053_p13, %p1783_p2  ;;  %p1333_p10 = scmp.ne.s32.totalorder %s277_s22, %s1332_s8 }
  0x89   : > { %s1337_s5 = sshll.u32 %s1494_s18, 4  ;;  %s1338_s5 = int_to_ptr.vmem [resolvable:$false] %s1337_s5 }
  0x8a   : > { %p1321_p5 = pneg %p1821_p9  ;;  %s1339_s6 = scalar_lea.vmem %s1338_s5, 256 }
  0x8b   : > { %p1340_p12 = scmp.lt.s32.totalorder %s277_s22, %s1338_s5  ;;  %p1341_p6 = scmp.lt.s32.totalorder %s1339_s6, %s1332_s8 }
  0x8c   : > { %p1335_p11 = pnand %p1333_p10, %p1321_p5 }
  0x8d   : > { %p1342_p3 = por %p1341_p6, %p1340_p12 }
  0x8e   : > { %p1336_p4 = pneg %p1335_p11 }
  0x90   : > { %p1343_p1 = pnand %p1342_p3, %p1336_p4 }
  0x92   : > { %1346 = shalt.err (!%p1343_p1)
}
  0x93   : > { %s2055_s9 = sld [smem:[#allocation26_spill]] }
  0x94   : > { %s2056_s3 = sld [smem:[#allocation25_spill]] }
  0x99   : > { %1117 = dma.hbm_to_vmem [thread:$0]  (!%p1821_p9), %s274_s21, 128, %s277_s22, %s2055_s9  }
  0x9a   : > { %p2057_p2 = scmp.ne.s32.totalorder %s2056_s3, 0 }
  0x9b   : > { %s287_s23 = sand.u32 (!%p2057_p2), 1, %s1469_s10  }
  0x9c   : > { %285 = sbr.rel (%p2057_p2) target bundleno = 682 (0x2aa), region = 36  ;;  %s947_s26 = sshll.u32 (!%p2057_p2), %s287_s23, 6 }
  0x9d   : > { %s288_s19 = scalar_lea.sflag (!%p2057_p2), [#allocation7], %s287_s23  ;;  %s1833_s18 = scalar_lea.vmem (!%p2057_p2), [#allocation6], %s947_s26 }
  0xa1   : > { %1424 = dma.done.wait (%p1759_p0), %s288_s19, 1024  }
  0xa2   : > { %1426 = vsyncadd (%p1759_p0), %s288_s19, 4294966272  ;;  %s296_s28 = sand.u32 1, %s1712_s16   ;;  %s298_s22 = sand.u32 1, %s1457_s7  }
  0xa3   : > { %s948_s21 = sshll.u32 %s298_s22, 6  ;;  %s297_s8 = scalar_lea.sflag [#allocation10], %s296_s28 }
  0xa4   : > { %s1841_s5 = scalar_lea.vmem [#allocation9], %s948_s21 }
  0xa5   : > { %1428 = dma.done.wait (%p1768_p7), %s297_s8, 1024  }
  0xa6   : > { %1430 = vsyncadd (%p1768_p7), %s297_s8, 4294966272  ;;  %s307_s6 = sand.u32 1, %s1445_s1  }
  0xa7   : > { %s1850_s24 = sshll.u32 %s307_s6, 3 }
  0xa8   : > { %s309_s9 = scalar_lea.vmem [#allocation11], %s1850_s24 }
  0xa9   : > { %1432 = dma.done.wait (%p1797_p8), %s297_s8, 128  }
  0xaa   : > { %1434 = vsyncadd (%p1797_p8), %s297_s8, 4294967168  ;;  %s2058_s16 = sld [smem:[#allocation23_spill]]  ;;  %s1859_s23 = scalar_lea.vmem [#allocation12], %s1850_s24  ;;  %v1495_v0 = vmov 0.0  }
  0xab   : > { %361 = vst [vmem:[%s1859_s23] sm:$0xff] %v1495_v0  ;;  %365 = vst [vmem:[#allocation2 + $0x30] sm:$0xff] %v1495_v0 }
  0xac   : > { %366 = vst [vmem:[#allocation2] sm:$0xff] %v1495_v0  ;;  %367 = vst [vmem:[#allocation2 + $0x58] sm:$0xff] %v1495_v0 }
  0xad   : > { %368 = vst [vmem:[#allocation2 + $0x18] sm:$0xff] %v1495_v0  ;;  %369 = vst [vmem:[#allocation2 + $0x50] sm:$0xff] %v1495_v0 }
  0xae   : > { %370 = vst [vmem:[#allocation2 + $0x68] sm:$0xff] %v1495_v0  ;;  %371 = vst [vmem:[#allocation2 + $0x8] sm:$0xff] %v1495_v0 }
  0xaf   : > { %372 = vst [vmem:[#allocation2 + $0x48] sm:$0xff] %v1495_v0  ;;  %373 = vst [vmem:[#allocation2 + $0x40] sm:$0xff] %v1495_v0 }
  0xb0   : > { %s381_s3 = sld [smem:[#allocation5 + %s2058_s16]]  ;;  %374 = vst [vmem:[#allocation2 + $0x20] sm:$0xff] %v1495_v0  ;;  %375 = vst [vmem:[#allocation2 + $0x10] sm:$0xff] %v1495_v0 }
  0xb1   : > { %376 = vst [vmem:[#allocation2 + $0x38] sm:$0xff] %v1495_v0  ;;  %377 = vst [vmem:[#allocation2 + $0x60] sm:$0xff] %v1495_v0 }
  0xb2   : > { %378 = vst [vmem:[#allocation2 + $0x70] sm:$0xff] %v1495_v0  ;;  %379 = vst [vmem:[#allocation2 + $0x78] sm:$0xff] %v1495_v0 }
  0xb3   : > { %380 = vst [vmem:[#allocation2 + $0x28] sm:$0xff] %v1495_v0 }
  0xb6   : > { %p952_p0 = scmp.le.s32.totalorder %s381_s3, 0 }
  0xb8   : > { %385 = sbr.rel (%p952_p0) target bundleno = 432 (0x1b0), region = 60 }
  0xbd   : > { %v1227_v1 = vld [vmem:[%s1841_s5 + $0x38] sm:$0xff]   ;;  %v1228_v2 = vld [vmem:[%s1841_s5 + $0x30] sm:$0xff]   ;;  %v1229_v3 = vld [vmem:[%s1841_s5 + $0x28] sm:$0xff]  }
  0xbe   : > { %1009 = vmatprep.subr.bf16.mxu0 %v1227_v1  ;;  %1076 = vmatprep.subr.bf16.mxu1 %v1227_v1  ;;  %v1230_v4 = vld [vmem:[%s1841_s5 + $0x20] sm:$0xff]   ;;  %v1231_v7 = vld [vmem:[%s1841_s5 + $0x18] sm:$0xff]   ;;  %v1232_v8 = vld [vmem:[%s1841_s5 + $0x10] sm:$0xff]  }
  0xbf   : > { %1010 = vmatpush3.bf16.msra.mxu0 %v1227_v1  ;;  %1084 = vmatpush3.bf16.msra.mxu1 %v1227_v1  ;;  %v1235_v5 = vld [vmem:[%s1833_s18] sm:$0xff]   ;;  %v1233_v9 = vld [vmem:[%s1841_s5 + $0x8] sm:$0xff]   ;;  %v1239_v13 = vld [vmem:[%s1833_s18 + $0x10] sm:$0xff]  }
  0xc0   : > { %1011 = vmatprep.subr.bf16.mxu0 %v1228_v2  ;;  %1077 = vmatprep.subr.bf16.mxu1 %v1228_v2  ;;  %v1236_v6 = vld [vmem:[%s1833_s18 + $0x20] sm:$0xff]   ;;  %v1237_v11 = vld [vmem:[%s1833_s18 + $0x8] sm:$0xff]   ;;  %v1240_v14 = vld [vmem:[%s1833_s18 + $0x30] sm:$0xff]  }
  0xc1   : > { %1025 = vmatprep.mubr.bf16.mxu0 %v1235_v5  ;;  %1033 = vmatprep.mubr.bf16.mxu1 %v1236_v6  ;;  %v1234_v10 = vld [vmem:[%s1841_s5] sm:$0xff]   ;;  %v1238_v12 = vld [vmem:[%s1833_s18 + $0x28] sm:$0xff]   ;;  %v1241_v15 = vld [vmem:[%s1833_s18 + $0x18] sm:$0xff]  }
  0xc2   : > { %v1242_v16 = vld [vmem:[%s1833_s18 + $0x38] sm:$0xff]   ;;  %v396_v18 = vld [vmem:[#allocation2 + $0x10] sm:$0xff]  ;;  %v394_v22 = vld [vmem:[#allocation2 + $0x40] sm:$0xff] }
  0xc3   : > { %1012 = vmatpush3.bf16.msra.mxu0 %v1228_v2  ;;  %1085 = vmatpush3.bf16.msra.mxu1 %v1228_v2  ;;  %v388_v17 = vld [vmem:[#allocation2 + $0x58] sm:$0xff]  ;;  %v386_v21 = vld [vmem:[#allocation2 + $0x30] sm:$0xff]  ;;  %v387_v33 = vld [vmem:[#allocation2] sm:$0xff] }
  0xc4   : > { %1013 = vmatprep.subr.bf16.mxu0 %v1229_v3  ;;  %1078 = vmatprep.subr.bf16.mxu1 %v1229_v3  ;;  %v389_v27 = vld [vmem:[#allocation2 + $0x18] sm:$0xff]  ;;  %v395_v34 = vld [vmem:[#allocation2 + $0x20] sm:$0xff]  ;;  %v392_v39 = vld [vmem:[#allocation2 + $0x8] sm:$0xff] }
  0xc5   : > { %v397_v28 = vld [vmem:[#allocation2 + $0x38] sm:$0xff]  ;;  %v390_v45 = vld [vmem:[#allocation2 + $0x50] sm:$0xff]  ;;  %v398_v46 = vld [vmem:[#allocation2 + $0x60] sm:$0xff] }
  0xc6   : > { %v400_v40 = vld [vmem:[#allocation2 + $0x78] sm:$0xff]  ;;  %v393_v51 = vld [vmem:[#allocation2 + $0x48] sm:$0xff]  ;;  %v399_v58 = vld [vmem:[#allocation2 + $0x70] sm:$0xff] }
  0xc7   : > { %1014 = vmatpush3.bf16.msra.mxu0 %v1229_v3  ;;  %1086 = vmatpush3.bf16.msra.mxu1 %v1229_v3  ;;  %v401_v52 = vld [vmem:[#allocation2 + $0x28] sm:$0xff] }
  0xc8   : > { %1015 = vmatprep.subr.bf16.mxu0 %v1230_v4  ;;  %1079 = vmatprep.subr.bf16.mxu1 %v1230_v4  ;;  %v391_v57 = vld [vmem:[#allocation2 + $0x68] sm:$0xff] }
  0xcb   : > { %1016 = vmatpush3.bf16.msra.mxu0 %v1230_v4  ;;  %1087 = vmatpush3.bf16.msra.mxu1 %v1230_v4 }
  0xcc   : > { %1017 = vmatprep.subr.bf16.mxu0 %v1231_v7  ;;  %1080 = vmatprep.subr.bf16.mxu1 %v1231_v7 }
  0xcf   : > { %1018 = vmatpush3.bf16.msra.mxu0 %v1231_v7  ;;  %1088 = vmatpush3.bf16.msra.mxu1 %v1231_v7 }
  0xd0   : > { %1019 = vmatprep.subr.bf16.mxu0 %v1232_v8  ;;  %1081 = vmatprep.subr.bf16.mxu1 %v1232_v8 }
  0xd3   : > { %1020 = vmatpush3.bf16.msra.mxu0 %v1232_v8  ;;  %1089 = vmatpush3.bf16.msra.mxu1 %v1232_v8 }
  0xd4   : > { %1021 = vmatprep.subr.bf16.mxu0 %v1233_v9  ;;  %1082 = vmatprep.subr.bf16.mxu1 %v1233_v9 }
  0xd7   : > { %1022 = vmatpush3.bf16.msra.mxu0 %v1233_v9  ;;  %1090 = vmatpush3.bf16.msra.mxu1 %v1233_v9 }
  0xd8   : > { %1023 = vmatprep.subr.bf16.mxu0 %v1234_v10  ;;  %1083 = vmatprep.subr.bf16.mxu1 %v1234_v10 }
  0xdb   : > { %1024 = vmatpush3.bf16.msra.mxu0 %v1234_v10  ;;  %1091 = vmatpush3.bf16.msra.mxu1 %v1234_v10 }
  0xde   : > { %1026 = vmatmul.mubr.bf16.vlgmr.msra.gmra.mxu0 %v1237_v11  ;;  %1034 = vmatmul.mubr.bf16.vlgmr.msra.gmra.mxu1 %v1238_v12 }
  0xdf   : > { %1029 = vmatprep.mubr.bf16.mxu0 %v1239_v13  ;;  %1037 = vmatprep.mubr.bf16.mxu1 %v1240_v14 }
  0xe6   : > { %1030 = vmatmul.mubr.bf16.gmra.mxu0 %v1241_v15  ;;  %1038 = vmatmul.mubr.bf16.gmra.mxu1 %v1242_v16 }
 0x19e   : > { %v1027_v19 = vpop.f32.mrf.mxu0  ;;  %v1035_v20 = vpop.f32.mrf.mxu1 }
 0x19f   : > { %v629_v23 = vadd.f32 %v1027_v19, %v388_v17  ;;  %v637_v24 = vadd.f32 %v1035_v20, %v396_v18 }
 0x1a0   : > { %v564_v25 = vpop.f32.mrf.mxu0  ;;  %v596_v26 = vpop.f32.mrf.mxu1 }
 0x1a1   : > { %645 = vst [vmem:[#allocation2 + $0x58] sm:$0xff] %v629_v23  ;;  %653 = vst [vmem:[#allocation2 + $0x10] sm:$0xff] %v637_v24  ;;  %v627_v29 = vadd.f32 %v564_v25, %v386_v21  ;;  %v635_v30 = vadd.f32 %v596_v26, %v394_v22 }
 0x1a2   : > { %v1028_v31 = vpop.f32.mrf.mxu0  ;;  %v1036_v32 = vpop.f32.mrf.mxu1 }
 0x1a3   : > { %643 = vst [vmem:[#allocation2 + $0x30] sm:$0xff] %v627_v29  ;;  %651 = vst [vmem:[#allocation2 + $0x40] sm:$0xff] %v635_v30  ;;  %v630_v35 = vadd.f32 %v1028_v31, %v389_v27  ;;  %v638_v36 = vadd.f32 %v1036_v32, %v397_v28 }
 0x1a4   : > { %v567_v37 = vpop.f32.mrf.mxu0  ;;  %v599_v38 = vpop.f32.mrf.mxu1 }
 0x1a5   : > { %646 = vst [vmem:[#allocation2 + $0x18] sm:$0xff] %v630_v35  ;;  %654 = vst [vmem:[#allocation2 + $0x38] sm:$0xff] %v638_v36  ;;  %v628_v41 = vadd.f32 %v567_v37, %v387_v33  ;;  %v636_v42 = vadd.f32 %v599_v38, %v395_v34 }
 0x1a6   : > { %v1031_v43 = vpop.f32.mrf.mxu0  ;;  %v1039_v44 = vpop.f32.mrf.mxu1 }
 0x1a7   : > { %644 = vst [vmem:[#allocation2] sm:$0xff] %v628_v41  ;;  %652 = vst [vmem:[#allocation2 + $0x20] sm:$0xff] %v636_v42  ;;  %v633_v47 = vadd.f32 %v1031_v43, %v392_v39  ;;  %v641_v48 = vadd.f32 %v1039_v44, %v400_v40 }
 0x1a8   : > { %v580_v49 = vpop.f32.mrf.mxu0  ;;  %v612_v50 = vpop.f32.mrf.mxu1 }
 0x1a9   : > { %649 = vst [vmem:[#allocation2 + $0x8] sm:$0xff] %v633_v47  ;;  %657 = vst [vmem:[#allocation2 + $0x78] sm:$0xff] %v641_v48  ;;  %v631_v53 = vadd.f32 %v580_v49, %v390_v45  ;;  %v639_v54 = vadd.f32 %v612_v50, %v398_v46 }
 0x1aa   : > { %v1032_v55 = vpop.f32.mrf.mxu0  ;;  %v1040_v56 = vpop.f32.mrf.mxu1 }
 0x1ab   : > { %647 = vst [vmem:[#allocation2 + $0x50] sm:$0xff] %v631_v53  ;;  %655 = vst [vmem:[#allocation2 + $0x60] sm:$0xff] %v639_v54  ;;  %v634_v59 = vadd.f32 %v1032_v55, %v393_v51  ;;  %v642_v60 = vadd.f32 %v1040_v56, %v401_v52 }
 0x1ac   : > { %v583_v61 = vpop.f32.mrf.mxu0  ;;  %v615_v62 = vpop.f32.mrf.mxu1 }
 0x1ad   : > { %650 = vst [vmem:[#allocation2 + $0x48] sm:$0xff] %v634_v59  ;;  %658 = vst [vmem:[#allocation2 + $0x28] sm:$0xff] %v642_v60  ;;  %v632_v63 = vadd.f32 %v583_v61, %v391_v57  ;;  %v640_v1 = vadd.f32 %v615_v62, %v399_v58 }
 0x1af   : > { %648 = vst [vmem:[#allocation2 + $0x68] sm:$0xff] %v632_v63  ;;  %656 = vst [vmem:[#allocation2 + $0x70] sm:$0xff] %v640_v1 }
 0x1b0 PF: > { %1041 = vmatprep.subr.mxu0 %v1495_v0  ;;  %s2059_s26 = sld [smem:[#allocation28_spill]]  ;;  %v676_v4 = vld [vmem:[#allocation2 + $0x78] sm:$0xff]  ;;  %vm1496_vm0 = vmmov 0   ;;  %v672_v14 = vld [vmem:[#allocation2 + $0x10] sm:$0xff]  ;;  %v671_v17 = vld [vmem:[#allocation2 + $0x20] sm:$0xff]  ;;  %s805_s28 = sshll.u32 %s1859_s23, 4  ;;  %s806_s28 = int_to_ptr.vmem [resolvable:$true] %s805_s28 }
 0x1b1   : > { %1073 = vmatprep.mubr.msk.f32.mxu0 %vm1496_vm0, %v1495_v0  ;;  %v673_v10 = vld [vmem:[#allocation2 + $0x38] sm:$0xff]  ;;  %v670_v20 = vld [vmem:[#allocation2 + $0x40] sm:$0xff]  ;;  %v668_v26 = vld [vmem:[#allocation2 + $0x8] sm:$0xff]  ;;  %s2060_s19 = sld [smem:[#allocation23_spill]]  ;;  %s792_s24 = scalar_lea.sflag [#allocation8], %s307_s6 }
 0x1b2   : > { %v674_v8 = vld [vmem:[#allocation2 + $0x60] sm:$0xff]  ;;  %v666_v32 = vld [vmem:[#allocation2 + $0x50] sm:$0xff]  ;;  %v665_v35 = vld [vmem:[#allocation2 + $0x18] sm:$0xff]  ;;  %s2061_s8 = sld [smem:[#allocation29_spill]]  ;;  %p2063_p8 = scmp.ne.s32.totalorder %s2051_s12, 0 }
 0x1b3   : > { %v664_v38 = vld [vmem:[#allocation2 + $0x58] sm:$0xff]  ;;  %v663_v41 = vld [vmem:[#allocation2] sm:$0xff]  ;;  %v662_v44 = vld [vmem:[#allocation2 + $0x30] sm:$0xff]  ;;  %s1497_s3 = smov [#allocation12]  }
 0x1b4   : > { %v677_v2 = vld [vmem:[#allocation2 + $0x28] sm:$0xff]  ;;  %v717_v52 = vld [vmem:[%s1859_s23] sm:$0xff]  ;;  %s1351_s20 = sshll.u32 %s1497_s3, 4  ;;  %s1352_s20 = int_to_ptr.vmem [resolvable:$false] %s1351_s20 }
 0x1b5   : > { %v669_v23 = vld [vmem:[#allocation2 + $0x48] sm:$0xff]  ;;  %s1353_s25 = scalar_lea.vmem %s1352_s20, 256  ;;  %p1354_p13 = scmp.lt.s32.totalorder %s806_s28, %s1352_s20 }
 0x1b6   : > { %v1899_v3 = vld [vmem:[%s2059_s26] ss:$0 sm:$0xff]  ;;  %v675_v7 = vld [vmem:[#allocation2 + $0x70] sm:$0xff]  ;;  %v667_v29 = vld [vmem:[#allocation2 + $0x68] sm:$0xff] }
 0x1b7   : > { %v700_v5 = vadd.f32 %v1899_v3, %v677_v2  ;;  %v699_v6 = vadd.f32 %v1899_v3, %v676_v4  ;;  %v698_v9 = vadd.f32 %v1899_v3, %v675_v7  ;;  %v697_v13 = vadd.f32 %v1899_v3, %v674_v8  ;;  %v718_v51 = vld [vmem:[%s309_s9] sm:$0xff]  ;;  %s971_s18 = sshll.u32 %s2060_s19, 7  ;;  %s1347_s9 = scalar_lea.vmem %s806_s28, 128 }
 0x1b8   : > { %v696_v16 = vadd.f32 %v1899_v3, %v673_v10  ;;  %v695_v19 = vadd.f32 %v1899_v3, %v672_v14  ;;  %v694_v22 = vadd.f32 %v1899_v3, %v671_v17  ;;  %v693_v25 = vadd.f32 %v1899_v3, %v670_v20  ;;  %s2062_s5 = smov %s2061_s8  ;;  %s1941_s16 = scalar_lea.hbm %s2061_s8, %s971_s18 }
 0x1b9   : > { %v716_v11 = vmax.f32 %v700_v5, 0.0  ;;  %v715_v12 = vmax.f32 %v699_v6, 0.0  ;;  %v714_v15 = vmax.f32 %v698_v9, 0.0  ;;  %v713_v18 = vmax.f32 %v697_v13, 0.0  ;;  %p1348_p7 = scmp.ne.s32.totalorder %s806_s28, %s1347_s9  ;;  %p1355_p9 = scmp.lt.s32.totalorder %s1353_s25, %s1347_s9 }
 0x1ba   : > { %v712_v21 = vmax.f32 %v696_v16, 0.0  ;;  %v711_v24 = vmax.f32 %v695_v19, 0.0  ;;  %v710_v27 = vmax.f32 %v694_v22, 0.0  ;;  %v692_v28 = vadd.f32 %v1899_v3, %v669_v23 }
 0x1bb   : > { %1042 = vmatpush3.msra.mxu0 %v716_v11  ;;  %v709_v30 = vmax.f32 %v693_v25, 0.0  ;;  %v691_v31 = vadd.f32 %v1899_v3, %v668_v26  ;;  %v690_v34 = vadd.f32 %v1899_v3, %v667_v29  ;;  %v689_v37 = vadd.f32 %v1899_v3, %v666_v32  ;;  %p1349_p1 = pnand %p1348_p7, %p2063_p8  ;;  %p1356_p5 = por %p1355_p9, %p1354_p13 }
 0x1bc   : > { %1043 = vmatprep.subr.mxu0 %v1495_v0  ;;  %v708_v33 = vmax.f32 %v692_v28, 0.0  ;;  %v688_v40 = vadd.f32 %v1899_v3, %v665_v35  ;;  %v687_v43 = vadd.f32 %v1899_v3, %v664_v38  ;;  %v686_v46 = vadd.f32 %v1899_v3, %v663_v41 }
 0x1bd   : > { %1044 = vmatpush3.msra.mxu0 %v715_v12  ;;  %v707_v36 = vmax.f32 %v691_v31, 0.0  ;;  %v706_v39 = vmax.f32 %v690_v34, 0.0  ;;  %v705_v42 = vmax.f32 %v689_v37, 0.0  ;;  %v685_v48 = vadd.f32 %v1899_v3, %v662_v44  ;;  %p1350_p3 = pneg %p1349_p1 }
 0x1be   : > { %1045 = vmatprep.subr.mxu0 %v1495_v0  ;;  %v704_v45 = vmax.f32 %v688_v40, 0.0  ;;  %v703_v47 = vmax.f32 %v687_v43, 0.0  ;;  %v702_v49 = vmax.f32 %v686_v46, 0.0 }
 0x1bf   : > { %1046 = vmatpush3.msra.mxu0 %v714_v15  ;;  %v701_v50 = vmax.f32 %v685_v48, 0.0  ;;  %p1357_p10 = pnand %p1356_p5, %p1350_p3 }
 0x1c0   : > { %1047 = vmatprep.subr.mxu0 %v1495_v0 }
 0x1c1   : > { %1048 = vmatpush3.msra.mxu0 %v713_v18 }
 0x1c2   : > { %1049 = vmatprep.subr.mxu0 %v1495_v0 }
 0x1c3   : > { %1050 = vmatpush3.msra.mxu0 %v712_v21 }
 0x1c4   : > { %1051 = vmatprep.subr.mxu0 %v1495_v0 }
 0x1c5   : > { %1052 = vmatpush3.msra.mxu0 %v711_v24 }
 0x1c6   : > { %1053 = vmatprep.subr.mxu0 %v1495_v0 }
 0x1c7   : > { %1054 = vmatpush3.msra.mxu0 %v710_v27 }
 0x1c8   : > { %1055 = vmatprep.subr.mxu0 %v1495_v0 }
 0x1c9   : > { %1056 = vmatpush3.msra.mxu0 %v709_v30 }
 0x1ca   : > { %1057 = vmatprep.subr.mxu0 %v1495_v0 }
 0x1cb   : > { %1058 = vmatpush3.msra.mxu0 %v708_v33 }
 0x1cc   : > { %1059 = vmatprep.subr.mxu0 %v1495_v0 }
 0x1cd   : > { %1060 = vmatpush3.msra.mxu0 %v707_v36 }
 0x1ce   : > { %1061 = vmatprep.subr.mxu0 %v1495_v0 }
 0x1cf   : > { %1062 = vmatpush3.msra.mxu0 %v706_v39 }
 0x1d0   : > { %1063 = vmatprep.subr.mxu0 %v1495_v0 }
 0x1d1   : > { %1064 = vmatpush3.msra.mxu0 %v705_v42 }
 0x1d2   : > { %1065 = vmatprep.subr.mxu0 %v1495_v0 }
 0x1d3   : > { %1066 = vmatpush3.msra.mxu0 %v704_v45 }
 0x1d4   : > { %1067 = vmatprep.subr.mxu0 %v1495_v0 }
 0x1d5   : > { %1068 = vmatpush3.msra.mxu0 %v703_v47 }
 0x1d6   : > { %1069 = vmatprep.subr.mxu0 %v1495_v0 }
 0x1d7   : > { %1070 = vmatpush3.msra.mxu0 %v702_v49 }
 0x1d8   : > { %1071 = vmatprep.subr.mxu0 %v1495_v0 }
 0x1d9   : > { %1072 = vmatpush3.msra.mxu0 %v701_v50 }
 0x1da   : > { %1074 = vmatmul.mubr.f32.vlgmr.msra.gmra.mxu0 %v718_v51 }
 0x29a   : > { %v785_v53 = vpop.f32.mrf.mxu0 }
 0x29b   : > { %v789_v54 = vadd.f32 %v785_v53, %v717_v52 }
 0x29c   : > { %v1075_v55 = vpop.f32.mrf.mxu0 }
 0x29d   : > { %790 = vst [vmem:[%s1859_s23] sm:$0xff] %v789_v54 }
 0x29e   : > { %1360 = shalt.err (!%p1357_p10)
}
 0x29f   : > { %s1361_s23 = scalar_lea.hbm %s1941_s16, 128  ;;  %s1365_s19 = scalar_lea.hbm %s2062_s5, 256 }
 0x2a0   : > { %p1362_p11 = scmp.ne.s32.totalorder %s1941_s16, %s1361_s23  ;;  %p1366_p6 = scmp.lt.s32.totalorder %s1941_s16, %s2062_s5 }
 0x2a1   : > { %p1367_p2 = scmp.lt.s32.totalorder %s1365_s19, %s1361_s23 }
 0x2a2   : > { %p1363_p4 = pnand %p1362_p11, %p2063_p8 }
 0x2a3   : > { %p1368_p0 = por %p1367_p2, %p1366_p6 }
 0x2a4   : > { %p1364_p12 = pneg %p1363_p4 }
 0x2a6   : > { %p1369_p7 = pnand %p1368_p0, %p1364_p12 }
 0x2a8   : > { %1372 = shalt.err (!%p1369_p7)
}
 0x2a9   : > { %1102 = dma.vmem_to_hbm [thread:$0]  (%p2063_p8), %s806_s28, 128, %s1941_s16, %s792_s24  }
 0x2aa PF: > { %s817_s21 = sand.u32 1, %s1441_s0   ;;  %p2064_p1 = scmp.ne.s32.totalorder %s2052_s27, 0 }
 0x2ab   : > { %p2065_p3 = scmp.ge.s32.totalorder %s1485_s14, 2  ;;  %s818_s8 = scalar_lea.sflag [#allocation8], %s817_s21 }
 0x2ad   : > { %p1119_p13 = pnand %p2065_p3, %p2064_p1 }
 0x2af   : > { %p1120_p9 = pneg %p1119_p13 }
 0x2b1   : > { %1436 = dma.done.wait (%p1120_p9), %s818_s8, 128  }
 0x2b2   : > { %1438 = vsyncadd (%p1120_p9), %s818_s8, 4294967168  ;;  %s33_s14 = sadd.s32 1, %s1485_s14   ;;  %s2066_s12 = sld [smem:[#allocation22_spill]] }
 0x2b3   : > { %p30_p5 = scmp.ge.s32.totalorder %s33_s14, 4   ;;  %s2067_s8 = sld [smem:[#allocation24_spill]] }
 0x2b4   : > { %s2068_s0 = smov %s1445_s1  ;;  %s2069_s1 = smov %s1449_s29 }
 0x2b5   : > { %s2070_s29 = smov %s1788_s30  ;;  %s2071_s30 = smov %s1457_s7 }
 0x2b6   : > { %s2073_s9 = smov %s1469_s10  ;;  %s2074_s10 = smov %s1473_s11 }
 0x2b7   : > { %s2075_s11 = smov %s1793_s17  ;;  %32 = sbr.rel (!%p30_p5) target bundleno = 28 (0x1c), region = 121 }
 0x2b8   : > { %s2072_s7 = smov %s2066_s12  ;;  %s2076_s12 = smov %s1481_s13 }
 0x2b9   : > { %s2077_s13 = smov %s2079_s15 }
 0x2bc   :  { %823 = vsyncpa [#allocation7], 1 }
 0x2bd   :  { %825 = vsyncpa [#allocation7 + $0x1], 1 }
 0x2be   :  { %826 = vsyncpa [#allocation10], 1 }
 0x2bf   :  { %828 = vsyncpa [#allocation10 + $0x1], 1 }
 0x2c0   :  { %829 = vsyncpa [#allocation8], 1 }
 0x2c1   :  { %831 = vsyncpa [#allocation8 + $0x1], 1 }

</bundles_post_ra>
